<compile_context>
chip_gen: v7x
topology: tpu7x:2x2x1
jax: 0.10.0
libtpu: 0.0.40
codegen_flags: <defaults>
</compile_context>

<pallas_src>
import functools

import jax
import jax.numpy as jnp
import numpy as np
from jax import lax
from jax.experimental import pallas as pl
from jax.experimental.pallas import tpu as pltpu

_LANES = 128
_SUBLANES = 8


def _vmem_budget_bytes():
    """Generation-dependent scoped-VMEM cap (headroom under physical VMEM)."""
    try:
        kind = jax.devices()[0].device_kind.lower()
    except Exception:
        kind = ""
    if "v7" in kind:
        return 48 << 20            # v7x: 64 MiB physical per TensorCore
    if "v4" in kind or "v5" in kind or "v6" in kind:
        return 96 << 20            # 128 MiB physical
    return 16 << 20                # conservative default for unknown chips


def _pick_tile_rows(R, max_rows=512):
    """Largest row-tile that divides R, is a multiple of 8, and is <= max_rows.

    Returns None when R > max_rows and R is not a multiple of 8 (caller pads).
    """
    if R <= max_rows:
        return R                   # single full-extent tile (allowed even if R % 8 != 0)
    if R % _SUBLANES:
        return None
    m = R // _SUBLANES
    for d in range(min(max_rows // _SUBLANES, m), 0, -1):
        if m % d == 0:
            return d * _SUBLANES
    return _SUBLANES


# ----------------------------- kernels --------------------------------------


def _rmsnorm_resident_kernel(x_ref, scale_ref, o_ref, *, n_elems):
    """One whole (flattened, lane-dense) sample resident in VMEM."""
    x = x_ref[...].astype(jnp.float32)               # (1, R, 128)
    part = jnp.sum(x * x, axis=1, keepdims=True)     # sublane reduce -> (1, 1, 128)
    ssq = jnp.sum(part, axis=2, keepdims=True)       # one cross-lane reduce -> (1, 1, 1)
    inv = lax.rsqrt(ssq * (1.0 / n_elems))           # 1 / ff_rms
    s = scale_ref[...].astype(jnp.float32)           # (R, 128)
    o_ref[...] = (x * inv * s[None, :, :]).astype(o_ref.dtype)


def _rmsnorm_reduce_kernel(x_ref, inv_ref, *, n_elems):
    """Phase 1: grid = (B, RT); the (1,1,128) output block is resident across
    the r axis and doubles as the per-sample sum-of-squares accumulator."""
    r = pl.program_id(1)

    @pl.when(r == 0)
    def _():
        inv_ref[...] = jnp.zeros_like(inv_ref)

    x = x_ref[...].astype(jnp.float32)                        # (1, TR, 128)
    inv_ref[...] += jnp.sum(x * x, axis=1, keepdims=True)     # (1, 1, 128)

    @pl.when(r == pl.num_programs(1) - 1)
    def _():
        ssq = jnp.sum(inv_ref[...], axis=2, keepdims=True)    # (1, 1, 1)
        inv = lax.rsqrt(ssq * (1.0 / n_elems))                # 1 / ff_rms
        inv_ref[...] = jnp.broadcast_to(inv, inv_ref.shape)


def _rmsnorm_scale_kernel(inv_ref, x_ref, scale_ref, o_ref):
    """Phase 2: normalize one r tile of one sample and apply the learned scale."""
    inv = inv_ref[...]                                # (1, 1, 128) -- same value per lane
    x = x_ref[...].astype(jnp.float32)                # (1, TR, 128)
    s = scale_ref[...].astype(jnp.float32)            # (TR, 128)
    o_ref[...] = (x * inv * s[None, :, :]).astype(o_ref.dtype)


# ----------------------------- wrapper ---------------------------------------


def rmsnorm_pallas(x, scale, *, force_tiled=False, max_tile_rows=512):
    """Matches RMSNorm.forward of the PyTorch model. x: (B,S,D); scale: (>=S, D)."""
    B, S, D = x.shape
    assert scale.shape[0] >= S and scale.shape[1] == D
    scale = scale[:S, :]
    N = S * D
    itemsize = x.dtype.itemsize
    s_itemsize = scale.dtype.itemsize
    budget = _vmem_budget_bytes()

    # ---- choose path --------------------------------------------------------
    R_raw = pl.cdiv(N, _LANES)
    # resident path need: 2x in + 2x out double-buffers, resident scale,
    # ~2x full-block f32 reduce temporaries, plus slack.
    resident_need = (4 * R_raw * _LANES * itemsize
                     + R_raw * _LANES * s_itemsize
                     + 2 * R_raw * _LANES * 4
                     + (2 << 20))
    use_resident = (not force_tiled) and resident_need <= min(budget // 2, 24 << 20)

    # ---- layout: lane-dense (B, R, 128); pad only when unavoidable ----------
    if N % _LANES == 0 and (use_resident or _pick_tile_rows(N // _LANES, max_tile_rows) is not None):
        n_total = N                                   # free reshape, no HBM pad/slice passes
    else:
        # TODO(synk): masked tail store instead of pad/slice for ragged shapes.
        blk = _SUBLANES * _LANES
        n_total = ((N + blk - 1) // blk) * blk
    n_pad = n_total - N
    R = n_total // _LANES

    x2 = x.reshape(B, N)
    s2 = scale.reshape(N)
    if n_pad:
        x2 = jnp.pad(x2, ((0, 0), (0, n_pad)))        # zeros leave sum(x^2) unchanged
        s2 = jnp.pad(s2, (0, n_pad))
    x3 = x2.reshape(B, R, _LANES)
    s3 = s2.reshape(R, _LANES)

    if use_resident:
        vmem_limit = int(min(max(resident_need, 16 << 20), budget))
        out = pl.pallas_call(
            functools.partial(_rmsnorm_resident_kernel, n_elems=N),
            out_shape=jax.ShapeDtypeStruct((B, R, _LANES), x.dtype),
            grid=(B,),
            in_specs=[
                pl.BlockSpec((1, R, _LANES), lambda b: (b, 0, 0)),
                # Constant across the grid: one whole-array VMEM copy.
                pl.BlockSpec(memory_space=pltpu.MemorySpace.VMEM),
            ],
            out_specs=pl.BlockSpec((1, R, _LANES), lambda b: (b, 0, 0)),
            compiler_params=pltpu.CompilerParams(
                dimension_semantics=("parallel",),
                vmem_limit_bytes=vmem_limit,
            ),
        )(x3, s3)
    else:
        tile_rows = _pick_tile_rows(R, max_tile_rows)
        RT = R // tile_rows
        tile_bytes = tile_rows * _LANES * itemsize
        stile_bytes = tile_rows * _LANES * s_itemsize
        f32_tile = tile_rows * _LANES * 4

        # Phase 1: per-sample sum-of-squares -> 1/ff_rms.
        need1 = 2 * tile_bytes + 2 * f32_tile + (1 << 20)
        inv = pl.pallas_call(
            functools.partial(_rmsnorm_reduce_kernel, n_elems=N),
            out_shape=jax.ShapeDtypeStruct((B, 1, _LANES), jnp.float32),
            grid=(B, RT),
            in_specs=[pl.BlockSpec((1, tile_rows, _LANES), lambda b, r: (b, r, 0))],
            out_specs=pl.BlockSpec((1, 1, _LANES), lambda b, r: (b, 0, 0)),
            compiler_params=pltpu.CompilerParams(
                dimension_semantics=("parallel", "arbitrary"),
                vmem_limit_bytes=int(min(max(need1, 16 << 20), budget)),
            ),
        )(x3)

        # Phase 2: re-stream r tiles and write normalized output. r is the OUTER
        # grid axis so the scale tile's block index is constant across the inner
        # b loop (scale HBM traffic stays 1x instead of Bx).
        need2 = 4 * tile_bytes + 2 * stile_bytes + 2 * f32_tile + (1 << 20)
        out = pl.pallas_call(
            _rmsnorm_scale_kernel,
            out_shape=jax.ShapeDtypeStruct((B, R, _LANES), x.dtype),
            grid=(RT, B),
            in_specs=[
                pl.BlockSpec((1, 1, _LANES), lambda r, b: (b, 0, 0)),
                pl.BlockSpec((1, tile_rows, _LANES), lambda r, b: (b, r, 0)),
                pl.BlockSpec((tile_rows, _LANES), lambda r, b: (r, 0)),
            ],
            out_specs=pl.BlockSpec((1, tile_rows, _LANES), lambda r, b: (b, r, 0)),
            compiler_params=pltpu.CompilerParams(
                dimension_semantics=("parallel", "parallel"),
                vmem_limit_bytes=int(min(max(need2, 16 << 20), budget)),
            ),
        )(inv, x3, s3)

    out = out.reshape(B, R * _LANES)
    if n_pad:
        out = out[:, :N]
    return out.reshape(B, S, D)


if __name__ == "__main__":
    # Small shapes consistent with the module: (context_window, d_model) = (8, 32)
    B, S, D = 2, 8, 32
    key = jax.random.PRNGKey(0)
    x = jax.random.normal(key, (B, S, D), dtype=jnp.float32)
    scale = jnp.ones((S, D), dtype=jnp.float32)  # nn.Parameter(torch.ones(layer_shape))

    out = jax.jit(rmsnorm_pallas)(x, scale)
    jax.block_until_ready(out)

    # Host-side numpy reference (no extra XLA compiles -> keeps the run fast).
    def ref_rmsnorm(xh, sh):
        ff = np.linalg.norm(xh.reshape(xh.shape[0], -1), axis=-1) * (xh[0].size ** -0.5)
        return sh[None, :, :] * (xh / ff[:, None, None])

    ref = ref_rmsnorm(np.asarray(x, np.float32), np.asarray(scale, np.float32))
    assert np.allclose(np.asarray(out), ref, atol=1e-4, rtol=1e-4), "mismatch (resident path)"

    # Exercise the tiled two-phase path (what real Llama shapes take) at a small
    # shape: S=64, D=128 -> R=64, tile_rows=16 -> 4 accumulation steps per sample.
    B2, S2, D2 = 2, 64, 128
    x_big = jax.random.normal(jax.random.PRNGKey(1), (B2, S2, D2), dtype=jnp.float32)
    scale_big = 1.0 + 0.1 * jax.random.normal(jax.random.PRNGKey(2), (S2, D2), dtype=jnp.float32)
    tiled_fn = jax.jit(functools.partial(rmsnorm_pallas, force_tiled=True, max_tile_rows=16))
    out_big = tiled_fn(x_big, scale_big)
    jax.block_until_ready(out_big)
    ref_big = ref_rmsnorm(np.asarray(x_big, np.float32), np.asarray(scale_big, np.float32))
    assert np.allclose(np.asarray(out_big), ref_big, atol=1e-4, rtol=1e-4), "mismatch (tiled path)"

    print("KERNEL_OK")
</pallas_src>

<mosaic_0001>
module attributes {stable_mosaic.version = 11 : i64} {
  func.func @_rmsnorm_resident_kernel(%arg0: i32, %arg1: memref<1x2x128xf32, #tpu.memory_space<vmem>>, %arg2: memref<2x128xf32, #tpu.memory_space<vmem>>, %arg3: memref<1x2x128xf32, #tpu.memory_space<vmem>>) attributes {dimension_semantics = [#tpu.dimension_semantics<parallel>], iteration_bounds = array<i64: 2>, scalar_prefetch = 0 : i64, scratch_operands = 0 : i64, tpu.core_type = #tpu.core_type<tc>, window_params = [{transform_indices = @transform_0, window_bounds = array<i64: 1, 2, 128>}, {pipeline_mode = #tpu.pipeline_mode<synchronous>, transform_indices = @transform_1, window_bounds = array<i64: 2, 128>}, {transform_indices = @transform_2, window_bounds = array<i64: 1, 2, 128>}]} {
    %c0 = arith.constant 0 : index
    %c0_0 = arith.constant 0 : index
    %c0_1 = arith.constant 0 : index
    %0 = vector.load %arg1[%c0, %c0_0, %c0_1] : memref<1x2x128xf32, #tpu.memory_space<vmem>>, vector<1x2x128xf32>
    %1 = arith.mulf %0, %0 : vector<1x2x128xf32>
    %cst = arith.constant dense<0.000000e+00> : vector<1x128xf32>
    %2 = vector.multi_reduction <add>, %1, %cst [1] : vector<1x2x128xf32> to vector<1x128xf32>
    %3 = vector.shape_cast %2 : vector<1x128xf32> to vector<1x1x128xf32>
    %cst_2 = arith.constant dense<0.000000e+00> : vector<1x1xf32>
    %4 = vector.multi_reduction <add>, %3, %cst_2 [2] : vector<1x1x128xf32> to vector<1x1xf32>
    %5 = vector.shape_cast %4 : vector<1x1xf32> to vector<1x1x1xf32>
    %cst_3 = arith.constant 3.906250e-03 : f32
    %6 = vector.broadcast %cst_3 : f32 to vector<1x1x1xf32>
    %7 = arith.mulf %5, %6 : vector<1x1x1xf32>
    %8 = math.rsqrt %7 : vector<1x1x1xf32>
    %c0_4 = arith.constant 0 : index
    %c0_5 = arith.constant 0 : index
    %9 = vector.load %arg2[%c0_4, %c0_5] : memref<2x128xf32, #tpu.memory_space<vmem>>, vector<2x128xf32>
    %10 = vector.broadcast %8 : vector<1x1x1xf32> to vector<1x2x128xf32>
    %11 = arith.mulf %0, %10 : vector<1x2x128xf32>
    %12 = vector.shape_cast %9 : vector<2x128xf32> to vector<1x2x128xf32>
    %13 = arith.mulf %11, %12 : vector<1x2x128xf32>
    %c0_6 = arith.constant 0 : index
    %c0_7 = arith.constant 0 : index
    %c0_8 = arith.constant 0 : index
    %14 = vector.load %arg3[%c0_6, %c0_7, %c0_8] : memref<1x2x128xf32, #tpu.memory_space<vmem>>, vector<1x2x128xf32>
    tpu.vector_store %arg3[%c0_6, %c0_7, %c0_8], %13 {strides = array<i32>} : memref<1x2x128xf32, #tpu.memory_space<vmem>>, vector<1x2x128xf32>,
    return
  }
  func.func @transform_0(%arg0: i32) -> (i32, i32, i32) {
    %c0_i32 = arith.constant 0 : i32
    %c0_i32_0 = arith.constant 0 : i32
    %c0_i32_1 = arith.constant 0 : i32
    return %arg0, %c0_i32, %c0_i32_0 : i32, i32, i32
  }
  func.func @transform_1(%arg0: i32) -> (i32, i32) {
    %c0_i32 = arith.constant 0 : i32
    %c0_i32_0 = arith.constant 0 : i32
    %c0_i32_1 = arith.constant 0 : i32
    return %c0_i32, %c0_i32_0 : i32, i32
  }
  func.func @transform_2(%arg0: i32) -> (i32, i32, i32) {
    %c0_i32 = arith.constant 0 : i32
    %c0_i32_0 = arith.constant 0 : i32
    %c0_i32_1 = arith.constant 0 : i32
    return %arg0, %c0_i32, %c0_i32_0 : i32, i32, i32
  }
}

</mosaic_0001>

<bundles_post_ra>
// kernel: rmsnorm_pallas.1
= control target key start
LH: loop header
LB: loop body
LE: loop exit
PB: predicated region body
PF: predicated region fallthrough
CT: control target
= control target key end

     0   :  { %s252_s9 = smov 0   ;;  %s272_s0 = inlined_call_operand.vmem [shape: f32[2,2,128], index: 0, kind: input, shape index: {}]   ;;  %s273_s1 = inlined_call_operand.vmem [shape: f32[2,128], index: 1, kind: input, shape index: {}]   ;;  %s274_s2 = inlined_call_operand.vmem [shape: f32[2,2,128], index: 2, kind: output, shape index: {}]  }
   0x1 LB: > { %s210_s10 = sadd.s32 4294967295, %s235_s9   ;;  %p214_p0 = scmp.ge.s32.totalorder %s235_s9, 1  ;;  %s235_s9 = sphi %s252_s9, %s12_s9  }
   0x2   : > { %p111_p1 = scmp.lt.s32.totalorder %s235_s9, 3 }
   0x4   : > { %p112_p2 = pnand %p214_p0, %p111_p1 }
   0x5   : > { %p131_p3 = scmp.lt.s32.totalorder (!%p112_p2), %s210_s10, 1  ;;  %vm141_vm0 = vcmask (!%p112_p2), 1041408   ;;  %v153_v12 = vld [vmem:[%s273_s1] sm:$0x3] (!%p112_p2) }
   0x6   : > { %115 = sbr.rel (%p112_p2) target bundleno = 192 (0xc0), region = 28 }
   0xd   : > { %s276_s10 = smov (!%p131_p3, %s210_s10), 1 }
   0xe   : > { %s215_s11 = sshll.u32 %s276_s10, 1 }
   0xf   : > { %s134_s14 = scalar_lea.vmem %s272_s0, %s215_s11  ;;  %s138_s19 = scalar_lea.vmem %s274_s2, %s215_s11 }
  0x10   : > { %v139_v0 = vld [vmem:[%s134_s14] sm:$0x3] }
  0x11   : > { %v140_v1 = vmul.f32 %v139_v0, %v139_v0 }
  0x13   : > { %v142_v2 = vsel %vm141_vm0, %v140_v1, 0.0 }
  0x14   : > { %v143_v3 = vrot.slane %v142_v2, 4 }
  0x16   : > { %v144_v4 = vadd.f32 %v143_v3, %v142_v2 }
  0x18   : > { %v145_v5 = vrot.slane %v144_v4, 2 }
  0x1a   : > { %v146_v6 = vadd.f32 %v145_v5, %v144_v4 }
  0x1c   : > { %v147_v7 = vrot.slane %v146_v6, 1 }
  0x1e   : > { %v148_v8 = vadd.f32 %v147_v7, %v146_v6 }
  0x20   : > { %149 = vadd.xlane.f32.xlu0 %v148_v8 }
  0xad   : > { %v150_v9 = vpop.xlane.xlu0 %149 }
  0xae   : > { %v151_v10 = vmul.f32 0.00390625, %v150_v9 }
  0xb0   : > { %227 = vrsqrt.f32 %v151_v10 }
  0xba   : > { %v228_v11 = vpop.eup %227 }
  0xbb   : > { %v154_v13 = vmul.f32 %v228_v11, %v139_v0 }
  0xbd   : > { %v155_v14 = vmul.f32 %v154_v13, %v153_v12 }
  0xbf   : > { %156 = vst [vmem:[%s138_s19] sm:$0x3] %v155_v14 }
  0xc0 PF: > { %s12_s9 = sadd.s32 1, %s235_s9  }
  0xc1   : > { %p9_p4 = scmp.ge.s32.totalorder %s12_s9, 4  }
  0xc3   :  { %11 = sbr.rel (!%p9_p4) target bundleno = 1 (0x1), region = 58 }

</bundles_post_ra>
